<compile_context>
chip_gen: v7x
topology: tpu7x:2x2x1
jax: 0.10.0
libtpu: 0.0.40
codegen_flags: <defaults>
</compile_context>

<pallas_src>
import functools
import math

import jax
import jax.numpy as jnp
from jax.experimental import pallas as pl
from jax.experimental.pallas import tpu as pltpu

EPS = 1e-5
VMEM_LIMIT = 48 * 1024 * 1024        # well under v7x's 64 MiB physical VMEM


def _round_up(x, m):
    return ((x + m - 1) // m) * m


def _cparams(sem):
    return pltpu.CompilerParams(dimension_semantics=sem,
                                vmem_limit_bytes=VMEM_LIMIT)


# ---------------------------------------------------------------------------
# GEMM kernel with fused BatchNorm-statistics epilogue (sum / sum-of-squares).
# ---------------------------------------------------------------------------
def _gemm_bn_kernel(a_ref, b_ref, o_ref, sum_ref, ssq_ref, acc_ref):
    acc_ref[...] = jnp.dot(a_ref[...], b_ref[...],
                           preferred_element_type=jnp.float32)
    acc = acc_ref[...]
    o_ref[...] = acc.astype(o_ref.dtype)
    s = jnp.sum(acc, axis=0, keepdims=True).reshape(1, 1, -1)
    sq = jnp.sum(acc * acc, axis=0, keepdims=True).reshape(1, 1, -1)
    sum_ref[...] = jnp.broadcast_to(s, sum_ref.shape)
    ssq_ref[...] = jnp.broadcast_to(sq, ssq_ref.shape)


def _gemm_with_stats(a, b):
    """a:(M,K) bf16, b:(K,C) bf16 -> (y (M,C) bf16, sum (C,) f32, sumsq (C,) f32)."""
    M, K = a.shape
    C = b.shape[1]
    tm = 256 if M >= 256 else _round_up(M, 16)
    tn = C if (C <= 256 or C % 256 != 0) else 256
    Mp = _round_up(M, tm)
    if Mp != M:                                      # only pad when needed
        a = jnp.pad(a, ((0, Mp - M), (0, 0)))
    mi, nj = Mp // tm, C // tn
    y, s, sq = pl.pallas_call(
        _gemm_bn_kernel,
        out_shape=(jax.ShapeDtypeStruct((Mp, C), jnp.bfloat16),
                   jax.ShapeDtypeStruct((mi, 8, C), jnp.float32),
                   jax.ShapeDtypeStruct((mi, 8, C), jnp.float32)),
        grid_spec=pltpu.PrefetchScalarGridSpec(
            num_scalar_prefetch=0,
            grid=(mi, nj),
            in_specs=[pl.BlockSpec((tm, K), lambda i, j: (i, 0)),   # full-K block
                      pl.BlockSpec((K, tn), lambda i, j: (0, j))],
            out_specs=(pl.BlockSpec((tm, tn), lambda i, j: (i, j)),
                       pl.BlockSpec((1, 8, tn), lambda i, j: (i, 0, j)),
                       pl.BlockSpec((1, 8, tn), lambda i, j: (i, 0, j))),
            scratch_shapes=[pltpu.VMEM((tm, tn), jnp.float32)]),
        compiler_params=_cparams(("parallel", "parallel")),
    )(a, b)
    return y[:M], jnp.sum(s[:, 0, :], axis=0), jnp.sum(sq[:, 0, :], axis=0)


# ---------------------------------------------------------------------------
# 3x3 / stride-1 / pad-1 conv: 9 shifted matmuls over one VMEM-resident padded
# slab (no im2col materialization).  Also emits fused BN statistics.
# ---------------------------------------------------------------------------
def _conv3x3_kernel(x_ref, w_ref, o_ref, sum_ref, ssq_ref, acc_ref,
                    *, wp, hp, tm, m_valid):
    i = pl.program_id(0)
    r = pl.program_id(2)            # tap index: r = kh*3 + kw

    @pl.when(r == 0)
    def _():
        acc_ref[...] = jnp.zeros_like(acc_ref)

    kh = r // 3
    kw = r - kh * 3
    start = i * tm + kh * wp + kw   # shifted window into the extended padded slab
    a = x_ref[pl.ds(start, tm), :]
    acc_ref[...] += jnp.dot(a, w_ref[0], preferred_element_type=jnp.float32)

    @pl.when(r == 8)
    def _():
        # mask rows that correspond to padding / overrun before storing + stats
        q = i * tm + jax.lax.broadcasted_iota(jnp.int32, (tm, 1), 0)
        h = (q // wp) % hp
        w = q % wp
        valid = ((q < m_valid) & (h >= 1) & (h <= hp - 2)
                 & (w >= 1) & (w <= wp - 2))
        acc = jnp.where(valid, acc_ref[...], 0.0)
        o_ref[...] = acc.astype(o_ref.dtype)
        s = jnp.sum(acc, axis=0, keepdims=True).reshape(1, 1, -1)
        sq = jnp.sum(acc * acc, axis=0, keepdims=True).reshape(1, 1, -1)
        sum_ref[...] = jnp.broadcast_to(s, sum_ref.shape)
        ssq_ref[...] = jnp.broadcast_to(sq, ssq_ref.shape)


def _conv3x3_s1_fused(x, w):
    """Returns y in padded coords (N,H+2,W+2,Cout) + channel sum/sumsq over the interior."""
    N, H, W, Cin = x.shape
    Cout = w.shape[-1]
    hp, wp = H + 2, W + 2
    m_pc = N * hp * wp                              # rows in padded coordinates
    tm = 256 if m_pc >= 256 else _round_up(m_pc, 16)
    tn = Cout if (Cout <= 256 or Cout % 256 != 0) else 256
    mi = -(-m_pc // tm)
    mp_out = mi * tm
    nj = Cout // tn

    x_flat = jnp.pad(x, ((0, 0), (1, 1), (1, 1), (0, 0))).reshape(-1, Cin)
    front = wp + 1
    rx = _round_up(mp_out + 2 * wp + 2, 8)
    x_ext = jnp.pad(x_flat, ((front, rx - front - m_pc), (0, 0)))
    w9 = w.reshape(9, Cin, Cout)

    kern = functools.partial(_conv3x3_kernel, wp=wp, hp=hp, tm=tm, m_valid=m_pc)
    y, s, sq = pl.pallas_call(
        kern,
        out_shape=(jax.ShapeDtypeStruct((mp_out, Cout), jnp.bfloat16),
                   jax.ShapeDtypeStruct((mi, 8, Cout), jnp.float32),
                   jax.ShapeDtypeStruct((mi, 8, Cout), jnp.float32)),
        grid_spec=pltpu.PrefetchScalarGridSpec(
            num_scalar_prefetch=0,
            grid=(mi, nj, 9),
            in_specs=[
                # whole padded slab, fetched once, resident across the grid
                pl.BlockSpec((rx, Cin), lambda i, j, r: (0, 0)),
                pl.BlockSpec((1, Cin, tn), lambda i, j, r: (r, 0, j)),
            ],
            out_specs=(pl.BlockSpec((tm, tn), lambda i, j, r: (i, j)),
                       pl.BlockSpec((1, 8, tn), lambda i, j, r: (i, 0, j)),
                       pl.BlockSpec((1, 8, tn), lambda i, j, r: (i, 0, j))),
            scratch_shapes=[pltpu.VMEM((tm, tn), jnp.float32)]),
        compiler_params=_cparams(("parallel", "parallel", "arbitrary")),
    )(x_ext, w9)
    y = y[:m_pc].reshape(N, hp, wp, Cout)
    return y, jnp.sum(s[:, 0, :], axis=0), jnp.sum(sq[:, 0, :], axis=0)
    # TODO(synk): for very large batch*H*W the resident slab should be tiled with a halo
    # instead of kept fully in VMEM.


# ---------------------------------------------------------------------------
# im2col fallback (only used for the 4 stride-2 3x3 convs, or if the fused
# shifted-slice kernel is unsupported by the local Mosaic build).
# ---------------------------------------------------------------------------
def _im2col(x, kh_, kw_, stride, padding):
    N, H, W, Cin = x.shape
    if padding:
        x = jnp.pad(x, ((0, 0), (padding, padding), (padding, padding), (0, 0)))
    hp, wp = x.shape[1], x.shape[2]
    ho = (hp - kh_) // stride + 1
    wo = (wp - kw_) // stride + 1
    cols = []
    for dh in range(kh_):
        for dw in range(kw_):
            cols.append(x[:, dh:dh + (ho - 1) * stride + 1:stride,
                          dw:dw + (wo - 1) * stride + 1:stride, :])
    patches = jnp.concatenate(cols, axis=-1)
    return patches.reshape(N * ho * wo, kh_ * kw_ * Cin), ho, wo


_shifted3x3 = {"enabled": True, "verified": False}


def conv2d_with_stats(x, w, stride, padding):
    """NHWC conv (bf16 MXU). Returns (y bf16 NHWC, channel sum f32, channel sumsq f32, count)."""
    N, H, W, Cin = x.shape
    KH, KW, _, Cout = w.shape
    x = x.astype(jnp.bfloat16)
    w = w.astype(jnp.bfloat16)
    if KH == 1 and KW == 1 and stride == 1 and padding == 0:
        y, s, sq = _gemm_with_stats(x.reshape(-1, Cin), w.reshape(Cin, Cout))
        return y.reshape(N, H, W, Cout), s, sq, N * H * W
    if (KH == 3 and KW == 3 and stride == 1 and padding == 1
            and _shifted3x3["enabled"]):
        try:
            y_pad, s, sq = _conv3x3_s1_fused(x, w)
            if not _shifted3x3["verified"]:
                jax.block_until_ready(y_pad)        # surface any lowering issue once
                _shifted3x3["verified"] = True
            return y_pad[:, 1:-1, 1:-1, :], s, sq, N * H * W
        except Exception:                           # one-time fallback to im2col
            _shifted3x3["enabled"] = False
    a, ho, wo = _im2col(x, KH, KW, stride, padding)
    y, s, sq = _gemm_with_stats(a, w.reshape(KH * KW * Cin, Cout))
    return y.reshape(N, ho, wo, Cout), s, sq, N * ho * wo


# ---------------------------------------------------------------------------
# Fused BN-affine (+residual) (+ReLU): tiled elementwise kernel, bf16 in/out,
# f32 math on the VPU.
# ---------------------------------------------------------------------------
def _affine_kernel(x_ref, s_ref, b_ref, o_ref, *, relu):
    y = x_ref[...].astype(jnp.float32) * s_ref[...] + b_ref[...]
    if relu:
        y = jnp.maximum(y, 0.0)
    o_ref[...] = y.astype(o_ref.dtype)


def _affine_add_kernel(x_ref, r_ref, s_ref, b_ref, o_ref, *, relu):
    y = (x_ref[...].astype(jnp.float32) * s_ref[...] + b_ref[...]
         + r_ref[...].astype(jnp.float32))
    if relu:
        y = jnp.maximum(y, 0.0)
    o_ref[...] = y.astype(o_ref.dtype)


def pallas_affine(x2d, scale, bias, relu, residual=None):
    M, C = x2d.shape
    s = scale.reshape(1, C).astype(jnp.float32)
    b = bias.reshape(1, C).astype(jnp.float32)
    if M <= 512:
        tm = M                                   # single full-extent block
    else:
        tm = 256 if C >= 2048 else 512
    grid = (-(-M // tm),)
    x_spec = pl.BlockSpec((tm, C), lambda i: (i, 0))
    sb_spec = pl.BlockSpec((1, C), lambda i: (0, 0))
    out_shape = jax.ShapeDtypeStruct((M, C), jnp.bfloat16)
    if residual is None:
        kern = functools.partial(_affine_kernel, relu=relu)
        args, in_specs = (x2d, s, b), [x_spec, sb_spec, sb_spec]
    else:
        kern = functools.partial(_affine_add_kernel, relu=relu)
        args = (x2d, residual.astype(jnp.bfloat16), s, b)
        in_specs = [x_spec, x_spec, sb_spec, sb_spec]
    return pl.pallas_call(
        kern,
        out_shape=out_shape,
        grid_spec=pltpu.PrefetchScalarGridSpec(
            num_scalar_prefetch=0, grid=grid,
            in_specs=in_specs, out_specs=x_spec),
        compiler_params=_cparams(("parallel",)),
    )(*args)


# ------------------------------- conv + BN glue --------------------------------
def conv_bn(x, w, gamma, beta, stride, padding, relu, residual=None):
    y, ch_sum, ch_ssq, count = conv2d_with_stats(x, w, stride, padding)
    mean = ch_sum / count
    var = jnp.maximum(ch_ssq / count - mean * mean, 0.0)   # biased (train-mode) BN
    scale = gamma / jnp.sqrt(var + EPS)
    bias = beta - mean * scale
    N, H, W, C = y.shape
    r2 = None if residual is None else residual.reshape(-1, C)
    out2 = pallas_affine(y.reshape(-1, C), scale, bias, relu, r2)
    return out2.reshape(N, H, W, C)


def max_pool_3x3_s2_p1(x):
    N, H, W, C = x.shape
    neg = jnp.asarray(-jnp.inf, x.dtype)
    xp = jnp.full((N, H + 2, W + 2, C), neg, x.dtype)
    xp = xp.at[:, 1:H + 1, 1:W + 1, :].set(x)
    ho = (H + 2 - 3) // 2 + 1
    wo = (W + 2 - 3) // 2 + 1
    out = None
    for kh in range(3):
        for kw in range(3):
            s = xp[:, kh:kh + (ho - 1) * 2 + 1:2, kw:kw + (wo - 1) * 2 + 1:2, :]
            out = s if out is None else jnp.maximum(out, s)
    return out


def avg_pool_2x2(x):
    N, H, W, C = x.shape
    y = x.astype(jnp.float32).reshape(N, H // 2, 2, W // 2, 2, C).mean(axis=(2, 4))
    return y.astype(x.dtype)


# -------------------------------- parameters ----------------------------------
def _xavier_conv(key, kh, kw, cin, cout):
    fan_in, fan_out = cin * kh * kw, cout * kh * kw
    bound = math.sqrt(6.0 / (fan_in + fan_out))
    return jax.random.uniform(key, (kh, kw, cin, cout), jnp.float32, -bound, bound)


def _bn_params(c):
    return jnp.ones((c,), jnp.float32), jnp.zeros((c,), jnp.float32)


STAGE_CFG = [(3, 64, 1), (4, 128, 2), (6, 256, 2), (3, 512, 2)]  # (blocks, mid, stride)


def init_params(key, nrof_classes):
    keys = iter(jax.random.split(key, 128))
    p = {'stem': [], 'stages': []}
    for cin, cout in [(3, 32), (32, 32), (32, 64)]:
        g, b = _bn_params(cout)
        p['stem'].append({'w': _xavier_conv(next(keys), 3, 3, cin, cout), 'g': g, 'b': b})
    in_c = 64
    for nblocks, mid, _stride in STAGE_CFG:
        blocks = []
        for bidx in range(nblocks):
            blk = {}
            blk['w1'] = _xavier_conv(next(keys), 1, 1, in_c, mid)
            blk['g1'], blk['b1'] = _bn_params(mid)
            blk['w2'] = _xavier_conv(next(keys), 3, 3, mid, mid)
            blk['g2'], blk['b2'] = _bn_params(mid)
            blk['w3'] = _xavier_conv(next(keys), 1, 1, mid, 4 * mid)
            blk['g3'], blk['b3'] = _bn_params(4 * mid)
            if bidx == 0:
                blk['wd'] = _xavier_conv(next(keys), 1, 1, in_c, 4 * mid)
                blk['gd'], blk['bd'] = _bn_params(4 * mid)
            blocks.append(blk)
            in_c = 4 * mid
        p['stages'].append(blocks)
    fan_in, fan_out = 2048, nrof_classes
    bound = math.sqrt(6.0 / (fan_in + fan_out))
    p['fc_w'] = jax.random.uniform(next(keys), (2048, nrof_classes), jnp.float32,
                                   -bound, bound)
    p['fc_b'] = jnp.zeros((nrof_classes,), jnp.float32)
    return p


# --------------------------------- forward ------------------------------------
def _bottleneck(x, blk, stride, downsample):
    if downsample:
        sc = avg_pool_2x2(x) if stride == 2 else x            # ResNet-D shortcut
        sc = conv_bn(sc, blk['wd'], blk['gd'], blk['bd'], 1, 0, relu=False)
    else:
        sc = x
    out = conv_bn(x, blk['w1'], blk['g1'], blk['b1'], 1, 0, relu=True)
    out = conv_bn(out, blk['w2'], blk['g2'], blk['b2'], stride, 1, relu=True)
    out = conv_bn(out, blk['w3'], blk['g3'], blk['b3'], 1, 0, relu=True, residual=sc)
    return out


def resnetd_forward(params, x_nchw):
    x = jnp.transpose(x_nchw, (0, 2, 3, 1)).astype(jnp.bfloat16)   # NCHW -> NHWC bf16
    # InputStem (deep stem)
    for layer, s in zip(params['stem'], [2, 1, 1]):
        x = conv_bn(x, layer['w'], layer['g'], layer['b'], s, 1, relu=True)
    x = max_pool_3x3_s2_p1(x)
    # Stages
    for (nblocks, _mid, stride), blocks in zip(STAGE_CFG, params['stages']):
        for bidx, blk in enumerate(blocks):
            s = stride if bidx == 0 else 1
            x = _bottleneck(x, blk, s, downsample=(bidx == 0))
    # AdaptiveAvgPool2d((1,1)) + flatten
    x = jnp.mean(x.astype(jnp.float32), axis=(1, 2))                # (N, 2048)
    # Final tiny FC (M = batch): launch/padding overhead of a Pallas call would
    # exceed the compute — let XLA handle it.
    return x @ params['fc_w'] + params['fc_b'][None, :]


if __name__ == "__main__":
    key = jax.random.PRNGKey(0)
    pkey, xkey = jax.random.split(key)
    nrof_classes = 10
    params = init_params(pkey, nrof_classes)
    # small spatial size (32x32) so the deepest stage still has >=1x1 feature maps
    x = jax.random.normal(xkey, (2, 3, 32, 32), jnp.float32)       # NCHW like PyTorch
    out = resnetd_forward(params, x)
    out = jax.block_until_ready(out)
    assert out.shape == (2, nrof_classes), out.shape
    assert bool(jnp.all(jnp.isfinite(out)))
    print("KERNEL_OK")
</pallas_src>

<mosaic_0001>
module attributes {stable_mosaic.version = 11 : i64} {
  func.func @_gemm_bn_kernel(%arg0: i32, %arg1: i32, %arg2: memref<256x27xbf16, #tpu.memory_space<vmem>>, %arg3: memref<27x32xbf16, #tpu.memory_space<vmem>>, %arg4: memref<256x32xbf16, #tpu.memory_space<vmem>>, %arg5: memref<1x8x32xf32, #tpu.memory_space<vmem>>, %arg6: memref<1x8x32xf32, #tpu.memory_space<vmem>>, %arg7: memref<256x32xf32, #tpu.memory_space<vmem>>) attributes {dimension_semantics = [#tpu.dimension_semantics<parallel>, #tpu.dimension_semantics<parallel>], iteration_bounds = array<i64: 2, 1>, scalar_prefetch = 0 : i64, scratch_operands = 1 : i64, tpu.core_type = #tpu.core_type<tc>, window_params = [{transform_indices = @transform_0, window_bounds = array<i64: 256, 27>}, {transform_indices = @transform_1, window_bounds = array<i64: 27, 32>}, {transform_indices = @transform_2, window_bounds = array<i64: 256, 32>}, {transform_indices = @transform_3, window_bounds = array<i64: 1, 8, 32>}, {transform_indices = @transform_4, window_bounds = array<i64: 1, 8, 32>}]} {
    %c0 = arith.constant 0 : index
    %c0_0 = arith.constant 0 : index
    %0 = vector.load %arg2[%c0, %c0_0] : memref<256x27xbf16, #tpu.memory_space<vmem>>, vector<256x27xbf16>
    %c0_1 = arith.constant 0 : index
    %c0_2 = arith.constant 0 : index
    %1 = vector.load %arg3[%c0_1, %c0_2] : memref<27x32xbf16, #tpu.memory_space<vmem>>, vector<27x32xbf16>
    %cst = arith.constant dense<0.000000e+00> : vector<256x32xf32>
    %2 = tpu.matmul %0, %1, %cst {dimension_numbers = #tpu.dot_dimension_numbers<[1], [0], [0], [1], [0, 0, 1, 1], [], []>} : vector<256x27xbf16>, vector<27x32xbf16>, vector<256x32xf32> -> vector<256x32xf32>
    %c0_3 = arith.constant 0 : index
    %c0_4 = arith.constant 0 : index
    %3 = vector.load %arg7[%c0_3, %c0_4] : memref<256x32xf32, #tpu.memory_space<vmem>>, vector<256x32xf32>
    tpu.vector_store %arg7[%c0_3, %c0_4], %2 {strides = array<i32>} : memref<256x32xf32, #tpu.memory_space<vmem>>, vector<256x32xf32>,
    %c0_5 = arith.constant 0 : index
    %c0_6 = arith.constant 0 : index
    %4 = vector.load %arg7[%c0_5, %c0_6] : memref<256x32xf32, #tpu.memory_space<vmem>>, vector<256x32xf32>
    %5 = arith.truncf %4 : vector<256x32xf32> to vector<256x32xbf16>
    %c0_7 = arith.constant 0 : index
    %c0_8 = arith.constant 0 : index
    %6 = vector.load %arg4[%c0_7, %c0_8] : memref<256x32xbf16, #tpu.memory_space<vmem>>, vector<256x32xbf16>
    tpu.vector_store %arg4[%c0_7, %c0_8], %5 {strides = array<i32>} : memref<256x32xbf16, #tpu.memory_space<vmem>>, vector<256x32xbf16>,
    %cst_9 = arith.constant dense<0.000000e+00> : vector<32xf32>
    %7 = vector.multi_reduction <add>, %4, %cst_9 [0] : vector<256x32xf32> to vector<32xf32>
    %8 = vector.shape_cast %7 : vector<32xf32> to vector<1x32xf32>
    %9 = vector.shape_cast %8 : vector<1x32xf32> to vector<1x1x32xf32>
    %10 = arith.mulf %4, %4 : vector<256x32xf32>
    %cst_10 = arith.constant dense<0.000000e+00> : vector<32xf32>
    %11 = vector.multi_reduction <add>, %10, %cst_10 [0] : vector<256x32xf32> to vector<32xf32>
    %12 = vector.shape_cast %11 : vector<32xf32> to vector<1x32xf32>
    %13 = vector.shape_cast %12 : vector<1x32xf32> to vector<1x1x32xf32>
    %14 = vector.shape_cast %9 : vector<1x1x32xf32> to vector<1x1x32xf32>
    %15 = vector.broadcast %14 : vector<1x1x32xf32> to vector<1x8x32xf32>
    %c0_11 = arith.constant 0 : index
    %c0_12 = arith.constant 0 : index
    %c0_13 = arith.constant 0 : index
    %16 = vector.load %arg5[%c0_11, %c0_12, %c0_13] : memref<1x8x32xf32, #tpu.memory_space<vmem>>, vector<1x8x32xf32>
    tpu.vector_store %arg5[%c0_11, %c0_12, %c0_13], %15 {strides = array<i32>} : memref<1x8x32xf32, #tpu.memory_space<vmem>>, vector<1x8x32xf32>,
    %17 = vector.shape_cast %13 : vector<1x1x32xf32> to vector<1x1x32xf32>
    %18 = vector.broadcast %17 : vector<1x1x32xf32> to vector<1x8x32xf32>
    %c0_14 = arith.constant 0 : index
    %c0_15 = arith.constant 0 : index
    %c0_16 = arith.constant 0 : index
    %19 = vector.load %arg6[%c0_14, %c0_15, %c0_16] : memref<1x8x32xf32, #tpu.memory_space<vmem>>, vector<1x8x32xf32>
    tpu.vector_store %arg6[%c0_14, %c0_15, %c0_16], %18 {strides = array<i32>} : memref<1x8x32xf32, #tpu.memory_space<vmem>>, vector<1x8x32xf32>,
    return
  }
  func.func @transform_0(%arg0: i32, %arg1: i32) -> (i32, i32) {
    %c0_i32 = arith.constant 0 : i32
    %c0_i32_0 = arith.constant 0 : i32
    return %arg0, %c0_i32 : i32, i32
  }
  func.func @transform_1(%arg0: i32, %arg1: i32) -> (i32, i32) {
    %c0_i32 = arith.constant 0 : i32
    %c0_i32_0 = arith.constant 0 : i32
    return %c0_i32, %arg1 : i32, i32
  }
  func.func @transform_2(%arg0: i32, %arg1: i32) -> (i32, i32) {
    %c0_i32 = arith.constant 0 : i32
    return %arg0, %arg1 : i32, i32
  }
  func.func @transform_3(%arg0: i32, %arg1: i32) -> (i32, i32, i32) {
    %c0_i32 = arith.constant 0 : i32
    %c0_i32_0 = arith.constant 0 : i32
    return %arg0, %c0_i32, %arg1 : i32, i32, i32
  }
  func.func @transform_4(%arg0: i32, %arg1: i32) -> (i32, i32, i32) {
    %c0_i32 = arith.constant 0 : i32
    %c0_i32_0 = arith.constant 0 : i32
    return %arg0, %c0_i32, %arg1 : i32, i32, i32
  }
}

</mosaic_0001>

<bundles_post_ra>
// kernel: tpu_custom_call.1
= control target key start
LH: loop header
LB: loop body
LE: loop exit
PB: predicated region body
PF: predicated region fallthrough
CT: control target
= control target key end

     0   :  { %10 = vsyncpa [#allocation4], 0  ;;  %s2067_s0 = inlined_call_operand.vmem [shape: bf16[512,27], index: 0, kind: input, shape index: {}]   ;;  %s2068_s1 = inlined_call_operand.vmem [shape: bf16[27,32], index: 1, kind: input, shape index: {}]   ;;  %s2069_s2 = inlined_call_operand.vmem [shape: bf16[512,32], index: 2, kind: output, shape index: {0}]   ;;  %s2070_s3 = inlined_call_operand.hbm [shape: f32[2,8,32], index: 3, kind: output, shape index: {1}]   ;;  %s2071_s4 = inlined_call_operand.hbm [shape: f32[2,8,32], index: 4, kind: output, shape index: {2}]  }
   0x1   :  { %12 = vsyncpa [#allocation4 + $0x1], 0 }
   0x2   :  { %13 = vsyncpa [#allocation6], 0 }
   0x3   :  { %15 = vsyncpa [#allocation6 + $0x1], 0  ;;  %s1593_s15 = smov 0   ;;  %s1595_s16 = smov 0  }
   0x4   :  { %s1597_s17 = smov 0   ;;  %s1599_s18 = smov 0  }
   0x5   :  { %s1601_s19 = smov 0   ;;  %s1603_s20 = smov 0  }
   0x6 LB: > { %s1200_s21 = sadd.s32 4294967295, %s1563_s20   ;;  %s1201_s22 = sadd.s32 4294967294, %s1563_s20   ;;  %s1563_s20 = sphi %s1603_s20, %s21_s20   ;;  %s1559_s19 = sphi %s1601_s19, %s2078_s19   ;;  %s1555_s18 = sphi %s1599_s18, %s2077_s18   ;;  %s1551_s17 = sphi %s1597_s17, %s2076_s17   ;;  %s1547_s16 = sphi %s1595_s16, %s2075_s16   ;;  %s1543_s15 = sphi %s1593_s15, %s2074_s15  }
   0x7   : > { %s33_s23 = sadd.s32 1, %s1559_s19  ;;  %s122_s24 = sadd.s32 1, %s1551_s17 }
   0x8   : > { %p35_p0 = scmp.ge.s32.totalorder %s33_s23, 2  ;;  %p132_p1 = scmp.ne.s32.totalorder %s1551_s17, %s1547_s16 }
   0x9   : > { %p133_p2 = scmp.eq.s32.totalorder %s1200_s21, 1  ;;  %p138_p3 = scmp.ne.s32.totalorder %s1547_s16, %s1543_s15 }
   0xa   : > { %s2080_s23 = smov (%p35_p0, %s33_s23), 0  ;;  %p139_p5 = scmp.eq.s32.totalorder %s1201_s22, 1 }
   0xb   : > { %p1633_p4 = por %p133_p2, %p132_p1  ;;  %s117_s26 = ssub.s32 %s1559_s19, %s2080_s23 }
   0xc   : > { %p1205_p6 = scmp.ge.s32.totalorder %s1563_s20, 1  ;;  %p120_p7 = scmp.eq.s32.totalorder %s117_s26, 0 }
   0xd   : > { %p1640_p8 = por %p139_p5, %p138_p3  ;;  %p201_p9 = scmp.lt.s32.totalorder %s1563_s20, 3 }
   0xe   : > { %s1646_s28 = scalar_select %p120_p7, %s1551_s17, %s122_s24  }
   0xf   : > { %p202_p10 = pnand %p1205_p6, %p201_p9 }
  0x10   : > { %v1435_v0 = vld [vmem:[%s2068_s1] sm:$0xff] (!%p202_p10)   ;;  %vm440_vm0 = vcmask (!%p202_p10), 1044480   ;;  %v1436_v1 = vld [vmem:[%s2068_s1 + $0x8] sm:$0x3f] (!%p202_p10)   ;;  %vm441_vm1 = vcmask (!%p202_p10), 1045504   ;;  %s1208_s7 = sshll.u32 (!%p202_p10), %s1555_s18, 5 }
  0x11   : > { %205 = sbr.rel (%p202_p10) target bundleno = 366 (0x16e), region = 28  ;;  %1334 = vmatprep.subr.bf16.mxu0 (!%p202_p10), %v1435_v0  ;;  %1370 = vmatprep.subr.bf16.mxu1 (!%p202_p10), %v1435_v0  ;;  %v1565_v2 = vmov (!%p202_p10), 65535   ;;  %p245_p11 = scmp.lt.s32.totalorder (!%p202_p10), %s1208_s7, 63  ;;  %vm391_vm2 = vcmask (!%p202_p10), 220160   ;;  %vm608_vm3 = vcmask (!%p202_p10), 261120   ;;  %vm801_vm4 = vcmask (!%p202_p10), 257024  }
  0x12   : > { %1335 = vmatpush3.bf16.msra.mxu0 (!%p202_p10), %v1435_v0  ;;  %v442_v3 = vsel (!%p202_p10), %vm440_vm0, 4294967295, %v1565_v2  ;;  %1372 = vmatpush3.bf16.msra.mxu1 (!%p202_p10), %v1435_v0  ;;  %s1976_s21 = sand.u32 (!%p202_p10), 1, %s1547_s16   ;;  %s1280_s24 = sshll.u32 (!%p202_p10), %s1555_s18, 7 }
  0x13   : > { %v443_v4 = vsel (!%p202_p10), %vm441_vm1, %v442_v3, 0  ;;  %s1206_s22 = sshll.u32 (!%p202_p10), %s1976_s21, 3  ;;  %s1995_s10 = scalar_lea.hbm (!%p202_p10), %s2071_s4, %s1280_s24 }
  0x14   : > { %v445_v5 = vand.u32 (!%p202_p10), %v1436_v1, %v443_v4  ;;  %s236_s26 = scalar_lea.vmem (!%p202_p10), [#allocation3], %s1206_s22  ;;  %s1981_s30 = scalar_lea.vmem (!%p202_p10), [#allocation5], %s1206_s22 }
  0x15   : > { %s1038_s29 = sshll.u32 (!%p202_p10), %s236_s26, 4  ;;  %s1052_s5 = sshll.u32 (!%p202_p10), %s1981_s30, 4  ;;  %s1989_s29 = int_to_ptr.vmem [resolvable:$true] %s1038_s29  ;;  %s1997_s5 = int_to_ptr.vmem [resolvable:$true] %s1052_s5 }
  0x16   : > { %1336 = vmatprep.subr.bf16.mxu0 (!%p202_p10), %v445_v5  ;;  %1371 = vmatprep.subr.bf16.mxu1 (!%p202_p10), %v445_v5  ;;  %s1453_s12 = scalar_lea.vmem (!%p202_p10), %s1989_s29, 128  ;;  %s1566_s13 = smov (!%p202_p10), [#allocation3]  }
  0x17   : > { %1337 = vmatpush3.bf16.msra.mxu0 (!%p202_p10), %v445_v5  ;;  %1373 = vmatpush3.bf16.msra.mxu1 (!%p202_p10), %v445_v5  ;;  %p1454_p12 = scmp.ne.s32.totalorder (!%p202_p10), %s1989_s29, %s1453_s12 }
  0x18   : > { %s2082_s7 = smov (!%p245_p11, %s1208_s7), 63 }
  0x19   : > { %s1209_s8 = sshll.u32 %s2082_s7, 2  ;;  %p1455_p13 = pnand %p1454_p12, %p1633_p4 }
  0x1a   : > { %s1663_s11 = scalar_lea.vmem %s2067_s0, %s1209_s8  ;;  %s1706_s14 = scalar_lea.vmem %s2069_s2, %s1209_s8 }
  0x1b   : > { %v1437_v6 = vld [vmem:[%s1663_s11] sm:$0xff]   ;;  %v1438_v7 = vld [vmem:[%s1663_s11 + $0x8] sm:$0xff]   ;;  %v1439_v8 = vld [vmem:[%s1663_s11 + $0x10] sm:$0xff]   ;;  %s1987_s8 = scalar_lea.hbm %s2070_s3, %s1280_s24  ;;  %p1456_p0 = pneg %p1455_p13 }
  0x1c   : > { %1338 = vmatprep.mubr.msk.bf16.mxu0 %vm391_vm2, %v1437_v6  ;;  %v1440_v9 = vld [vmem:[%s1663_s11 + $0x18] sm:$0xff]   ;;  %v1441_v10 = vld [vmem:[%s1663_s11 + $0x20] sm:$0xff]   ;;  %v1446_v12 = vld [vmem:[%s1663_s11 + $0x48] sm:$0xff]  }
  0x1d   : > { %1339 = vmatmul.mubr.msk.bf16.vlgmr.msra.gmra.mrb[0].mxu0 %vm391_vm2, %v1438_v7  ;;  %v1445_v11 = vld [vmem:[%s1663_s11 + $0x40] sm:$0xff]   ;;  %v1447_v13 = vld [vmem:[%s1663_s11 + $0x50] sm:$0xff]   ;;  %v1442_v14 = vld [vmem:[%s1663_s11 + $0x28] sm:$0xff]  }
  0x1e   : > { %1342 = vmatprep.mubr.msk.bf16.mxu0 %vm391_vm2, %v1439_v8  ;;  %1354 = vmatprep.mubr.msk.bf16.mxu1 %vm391_vm2, %v1445_v11  ;;  %v1448_v15 = vld [vmem:[%s1663_s11 + $0x58] sm:$0xff]   ;;  %v1443_v16 = vld [vmem:[%s1663_s11 + $0x30] sm:$0xff]   ;;  %v1449_v17 = vld [vmem:[%s1663_s11 + $0x60] sm:$0xff]  }
  0x1f   : > { %1355 = vmatmul.mubr.msk.bf16.vlgmr.msra.gmra.mrb[0].mxu1 %vm391_vm2, %v1446_v12  ;;  %v1444_v18 = vld [vmem:[%s1663_s11 + $0x38] sm:$0xff]   ;;  %v1450_v19 = vld [vmem:[%s1663_s11 + $0x68] sm:$0xff]   ;;  %v1451_v20 = vld [vmem:[%s1663_s11 + $0x70] sm:$0xff]  }
  0x20   : > { %1358 = vmatprep.mubr.msk.bf16.mxu1 %vm391_vm2, %v1447_v13  ;;  %v1452_v21 = vld [vmem:[%s1663_s11 + $0x78] sm:$0xff]   ;;  %s1015_s11 = scalar_lea.sflag [#allocation4], %s1976_s21 }
  0x25   : > { %1343 = vmatmul.mubr.msk.bf16.gmra.mrb[4].mxu0 %vm391_vm2, %v1440_v9 }
  0x26   : > { %1346 = vmatprep.mubr.msk.bf16.mxu0 %vm391_vm2, %v1441_v10 }
  0x27   : > { %1359 = vmatmul.mubr.msk.bf16.gmra.mrb[4].mxu1 %vm391_vm2, %v1448_v15 }
  0x28   : > { %1362 = vmatprep.mubr.msk.bf16.mxu1 %vm391_vm2, %v1449_v17 }
  0x2d   : > { %1347 = vmatmul.mubr.msk.bf16.gmra.mrb[8].mxu0 %vm391_vm2, %v1442_v14 }
  0x2e   : > { %1350 = vmatprep.mubr.msk.bf16.mxu0 %vm391_vm2, %v1443_v16 }
  0x2f   : > { %1363 = vmatmul.mubr.msk.bf16.gmra.mrb[8].mxu1 %vm391_vm2, %v1450_v19 }
  0x30   : > { %1366 = vmatprep.mubr.msk.bf16.mxu1 %vm391_vm2, %v1451_v20 }
  0x35   : > { %1351 = vmatmul.mubr.msk.bf16.gmra.mrb[12].mxu0 %vm391_vm2, %v1444_v18 }
  0x37   : > { %1367 = vmatmul.mubr.msk.bf16.gmra.mrb[12].mxu1 %vm391_vm2, %v1452_v21 }
  0xf0   : > { %v1340_v22 = vpop.f32.mrb[0].mxu0 }
  0xf1   : > { %611 = vst.msk [vmem:[#allocation2 + $0x10] sm:$0xff] %vm608_vm3, %v1340_v22  ;;  %v481_v23 = vpop.f32.mrb[1].mxu0 }
  0xf2   : > { %609 = vst.msk [vmem:[#allocation2] sm:$0xff] %vm608_vm3, %v481_v23  ;;  %v1341_v24 = vpop.f32.mrb[2].mxu0  ;;  %v1356_v28 = vpop.f32.mrb[0].mxu1 }
  0xf3   : > { %612 = vst.msk [vmem:[#allocation2 + $0x18] sm:$0xff] %vm608_vm3, %v1341_v24  ;;  %v484_v25 = vpop.f32.mrb[3].mxu0  ;;  %627 = vst.msk [vmem:[#allocation2 + $0x90] sm:$0xff] %vm608_vm3, %v1356_v28  ;;  %v545_v32 = vpop.f32.mrb[1].mxu1 }
  0xf4   : > { %610 = vst.msk [vmem:[#allocation2 + $0x8] sm:$0xff] %vm608_vm3, %v484_v25  ;;  %625 = vst.msk [vmem:[#allocation2 + $0x80] sm:$0xff] %vm608_vm3, %v545_v32  ;;  %v1357_v37 = vpop.f32.mrb[2].mxu1 }
  0xf5   : > { %628 = vst.msk [vmem:[#allocation2 + $0x98] sm:$0xff] %vm608_vm3, %v1357_v37  ;;  %v548_v42 = vpop.f32.mrb[3].mxu1 }
  0xf6   : > { %626 = vst.msk [vmem:[#allocation2 + $0x88] sm:$0xff] %vm608_vm3, %v548_v42 }
  0xf8   : > { %v643_v26 = vld [vmem:[#allocation2 + $0x10] sm:$0xff]  ;;  %v1344_v27 = vpop.f32.mrb[4].mxu0 }
  0xf9   : > { %v1286_v29 = vpack.c.bf16 %v643_v26, %v643_v26  ;;  %v641_v30 = vld [vmem:[#allocation2] sm:$0xff]  ;;  %615 = vst.msk [vmem:[#allocation2 + $0x30] sm:$0xff] %vm608_vm3, %v1344_v27  ;;  %v497_v31 = vpop.f32.mrb[5].mxu0  ;;  %v905_v38 = vmul.f32 %v643_v26, %v643_v26  ;;  %v837_v49 = vsel %vm608_vm3, %v643_v26, 0.0 }
  0xfa   : > { %v1284_v33 = vpack.c.bf16 %v641_v30, %v641_v30  ;;  %v903_v34 = vmul.f32 %v641_v30, %v641_v30  ;;  %v644_v35 = vld [vmem:[#allocation2 + $0x18] sm:$0xff]  ;;  %613 = vst.msk [vmem:[#allocation2 + $0x20] sm:$0xff] %vm608_vm3, %v497_v31  ;;  %v1345_v36 = vpop.f32.mrb[6].mxu0  ;;  %v834_v43 = vsel %vm608_vm3, %v641_v30, 0.0  ;;  %v1360_v57 = vpop.f32.mrb[4].mxu1  ;;  %v1736_v7 = vld [vmem:[#allocation2 + $0x90] sm:$0xff] }
  0xfb   : > { %804 = vst.msk [vmem:[%s1706_s14 + $0x8] sm:$0xf] %vm801_vm4, %v1286_v29  ;;  %v1287_v39 = vpack.c.bf16 %v644_v35, %v644_v35  ;;  %v642_v40 = vld [vmem:[#allocation2 + $0x8] sm:$0xff]  ;;  %v500_v41 = vpop.f32.mrb[7].mxu0  ;;  %v906_v47 = vmul.f32 %v644_v35, %v644_v35  ;;  %v938_v54 = vsel %vm608_vm3, %v905_v38, 0.0  ;;  %v839_v58 = vsel %vm608_vm3, %v644_v35, 0.0 }
  0xfc   : > { %616 = vst.msk [vmem:[#allocation2 + $0x38] sm:$0xff] %vm608_vm3, %v1345_v36  ;;  %v1285_v44 = vpack.c.bf16 %v642_v40, %v642_v40  ;;  %v835_v45 = vsel %vm608_vm3, %v642_v40, 0.0  ;;  %v904_v46 = vmul.f32 %v642_v40, %v642_v40  ;;  %614 = vst.msk [vmem:[#allocation2 + $0x28] sm:$0xff] %vm608_vm3, %v500_v41  ;;  %v935_v50 = vsel %vm608_vm3, %v903_v34, 0.0  ;;  %v561_v0 = vpop.f32.mrb[5].mxu1  ;;  %v1747_v18 = vld [vmem:[#allocation2 + $0x80] sm:$0xff] }
  0xfd   : > { %802 = vst.msk [vmem:[%s1706_s14] sm:$0xf] %vm801_vm4, %v1284_v33  ;;  %805 = vst.msk [vmem:[%s1706_s14 + $0xc] sm:$0xf] %vm801_vm4, %v1287_v39  ;;  %v836_v48 = vadd.f32 %v835_v45, %v834_v43  ;;  %v940_v59 = vsel %vm608_vm3, %v906_v47, 0.0  ;;  %v1361_v8 = vpop.f32.mrb[6].mxu1  ;;  %v1302_v22 = vpack.c.bf16 %v1736_v7, %v1736_v7  ;;  %v1300_v28 = vpack.c.bf16 %v1747_v18, %v1747_v18 }
  0xfe   : > { %803 = vst.msk [vmem:[%s1706_s14 + $0x4] sm:$0xf] %vm801_vm4, %v1285_v44  ;;  %v936_v51 = vsel %vm608_vm3, %v904_v46, 0.0  ;;  %v564_v13 = vpop.f32.mrb[7].mxu1  ;;  %v1755_v23 = vld [vmem:[#allocation2 + $0x98] sm:$0xff] }
  0xff   : > { %v838_v52 = vadd.f32 %v837_v49, %v836_v48  ;;  %v937_v53 = vadd.f32 %v936_v51, %v935_v50  ;;  %631 = vst.msk [vmem:[#allocation2 + $0xb0] sm:$0xff] %vm608_vm3, %v1360_v57  ;;  %629 = vst.msk [vmem:[#allocation2 + $0xa0] sm:$0xff] %vm608_vm3, %v561_v0  ;;  %v1303_v33 = vpack.c.bf16 %v1755_v23, %v1755_v23  ;;  %v1786_v57 = vld [vmem:[#allocation2 + $0x88] sm:$0xff] }
 0x100   : > { %v647_v55 = vld [vmem:[#allocation2 + $0x30] sm:$0xff]  ;;  %v1348_v56 = vpop.f32.mrb[8].mxu0  ;;  %632 = vst.msk [vmem:[#allocation2 + $0xb8] sm:$0xff] %vm608_vm3, %v1361_v8  ;;  %630 = vst.msk [vmem:[#allocation2 + $0xa8] sm:$0xff] %vm608_vm3, %v564_v13 }
 0x101   : > { %v939_v60 = vadd.f32 %v938_v54, %v937_v53  ;;  %v1290_v61 = vpack.c.bf16 %v647_v55, %v647_v55  ;;  %v645_v62 = vld [vmem:[#allocation2 + $0x20] sm:$0xff]  ;;  %619 = vst.msk [vmem:[#allocation2 + $0x50] sm:$0xff] %vm608_vm3, %v1348_v56  ;;  %v513_v63 = vpop.f32.mrb[9].mxu0  ;;  %v840_v2 = vadd.f32 %v839_v58, %v838_v52  ;;  %v909_v14 = vmul.f32 %v647_v55, %v647_v55 }
 0x102   : > { %v1288_v1 = vpack.c.bf16 %v645_v62, %v645_v62  ;;  %v841_v3 = vsel %vm608_vm3, %v645_v62, 0.0  ;;  %v907_v4 = vmul.f32 %v645_v62, %v645_v62  ;;  %617 = vst.msk [vmem:[#allocation2 + $0x40] sm:$0xff] %vm608_vm3, %v513_v63  ;;  %v1349_v6 = vpop.f32.mrb[10].mxu0  ;;  %v845_v25 = vsel %vm608_vm3, %v647_v55, 0.0  ;;  %v1364_v34 = vpop.f32.mrb[8].mxu1 }
 0x103   : > { %v648_v5 = vld [vmem:[#allocation2 + $0x38] sm:$0xff]  ;;  %808 = vst.msk [vmem:[%s1706_s14 + $0x18] sm:$0xf] %vm801_vm4, %v1290_v61  ;;  %v941_v9 = vadd.f32 %v940_v59, %v939_v60  ;;  %v646_v11 = vld [vmem:[#allocation2 + $0x28] sm:$0xff]  ;;  %v516_v12 = vpop.f32.mrb[11].mxu0  ;;  %v842_v15 = vadd.f32 %v841_v3, %v840_v2  ;;  %v946_v35 = vsel %vm608_vm3, %v909_v14, 0.0 }
 0x104   : > { %v1291_v10 = vpack.c.bf16 %v648_v5, %v648_v5  ;;  %620 = vst.msk [vmem:[#allocation2 + $0x58] sm:$0xff] %vm608_vm3, %v1349_v6  ;;  %v942_v16 = vsel %vm608_vm3, %v907_v4, 0.0  ;;  %v1289_v17 = vpack.c.bf16 %v646_v11, %v646_v11  ;;  %618 = vst.msk [vmem:[#allocation2 + $0x48] sm:$0xff] %vm608_vm3, %v516_v12  ;;  %v843_v20 = vsel %vm608_vm3, %v646_v11, 0.0  ;;  %v577_v40 = vpop.f32.mrb[9].mxu1 }
 0x105   : > { %806 = vst.msk [vmem:[%s1706_s14 + $0x10] sm:$0xf] %vm801_vm4, %v1288_v1  ;;  %v943_v19 = vadd.f32 %v942_v16, %v941_v9  ;;  %v908_v21 = vmul.f32 %v646_v11, %v646_v11  ;;  %v844_v24 = vadd.f32 %v843_v20, %v842_v15  ;;  %v910_v26 = vmul.f32 %v648_v5, %v648_v5  ;;  %v1365_v47 = vpop.f32.mrb[10].mxu1 }
 0x106   : > { %809 = vst.msk [vmem:[%s1706_s14 + $0x1c] sm:$0xf] %vm801_vm4, %v1291_v10  ;;  %807 = vst.msk [vmem:[%s1706_s14 + $0x14] sm:$0xf] %vm801_vm4, %v1289_v17  ;;  %v847_v36 = vsel %vm608_vm3, %v648_v5, 0.0  ;;  %v580_v53 = vpop.f32.mrb[11].mxu1  ;;  %v1301_v4 = vpack.c.bf16 %v1786_v57, %v1786_v57  ;;  %v919_v15 = vmul.f32 %v1747_v18, %v1747_v18 }
 0x107   : > { %v944_v27 = vsel %vm608_vm3, %v908_v21, 0.0  ;;  %820 = vst.msk [vmem:[%s1706_s14 + $0x48] sm:$0xf] %vm801_vm4, %v1302_v22  ;;  %v846_v29 = vadd.f32 %v845_v25, %v844_v24  ;;  %818 = vst.msk [vmem:[%s1706_s14 + $0x40] sm:$0xf] %vm801_vm4, %v1300_v28  ;;  %v948_v48 = vsel %vm608_vm3, %v910_v26, 0.0 }
 0x108   : > { %v945_v30 = vadd.f32 %v944_v27, %v943_v19  ;;  %v651_v31 = vld [vmem:[#allocation2 + $0x50] sm:$0xff]  ;;  %v1352_v32 = vpop.f32.mrb[12].mxu0  ;;  %635 = vst.msk [vmem:[#allocation2 + $0xd0] sm:$0xff] %vm608_vm3, %v1364_v34  ;;  %633 = vst.msk [vmem:[#allocation2 + $0xc0] sm:$0xff] %vm608_vm3, %v577_v40  ;;  %v865_v34 = vsel %vm608_vm3, %v1747_v18, 0.0  ;;  %v1831_v40 = vld [vmem:[#allocation2 + $0xa8] sm:$0xff] }
 0x109   : > { %v1294_v37 = vpack.c.bf16 %v651_v31, %v651_v31  ;;  %v649_v38 = vld [vmem:[#allocation2 + $0x40] sm:$0xff]  ;;  %623 = vst.msk [vmem:[#allocation2 + $0x70] sm:$0xff] %vm608_vm3, %v1352_v32  ;;  %v529_v39 = vpop.f32.mrb[13].mxu0  ;;  %v848_v43 = vadd.f32 %v847_v36, %v846_v29  ;;  %636 = vst.msk [vmem:[#allocation2 + $0xd8] sm:$0xff] %vm608_vm3, %v1365_v47  ;;  %v913_v58 = vmul.f32 %v651_v31, %v651_v31  ;;  %v1793_v62 = vld [vmem:[#allocation2 + $0xb0] sm:$0xff]  ;;  %v853_v1 = vsel %vm608_vm3, %v651_v31, 0.0 }
 0x10a   : > { %v947_v41 = vadd.f32 %v946_v35, %v945_v30  ;;  %v1292_v42 = vpack.c.bf16 %v649_v38, %v649_v38  ;;  %v849_v44 = vsel %vm608_vm3, %v649_v38, 0.0  ;;  %621 = vst.msk [vmem:[#allocation2 + $0x60] sm:$0xff] %vm608_vm3, %v529_v39  ;;  %v1353_v46 = vpop.f32.mrb[14].mxu0  ;;  %v911_v49 = vmul.f32 %v649_v38, %v649_v38  ;;  %634 = vst.msk [vmem:[#allocation2 + $0xc8] sm:$0xff] %vm608_vm3, %v580_v53  ;;  %v1368_v10 = vpop.f32.mrb[12].mxu1  ;;  %v1817_v29 = vld [vmem:[#allocation2 + $0xa0] sm:$0xff] }
 0x10b   : > { %v652_v45 = vld [vmem:[#allocation2 + $0x58] sm:$0xff]  ;;  %821 = vst.msk [vmem:[%s1706_s14 + $0x4c] sm:$0xf] %vm801_vm4, %v1303_v33  ;;  %812 = vst.msk [vmem:[%s1706_s14 + $0x28] sm:$0xf] %vm801_vm4, %v1294_v37  ;;  %v650_v51 = vld [vmem:[#allocation2 + $0x48] sm:$0xff]  ;;  %v850_v54 = vadd.f32 %v849_v44, %v848_v43  ;;  %v1306_v9 = vpack.c.bf16 %v1793_v62, %v1793_v62  ;;  %v1304_v43 = vpack.c.bf16 %v1817_v29, %v1817_v29 }
 0x10c   : > { %v1295_v50 = vpack.c.bf16 %v652_v45, %v652_v45  ;;  %624 = vst.msk [vmem:[#allocation2 + $0x78] sm:$0xff] %vm608_vm3, %v1353_v46  ;;  %v532_v52 = vpop.f32.mrb[15].mxu0  ;;  %v949_v55 = vadd.f32 %v948_v48, %v947_v41  ;;  %v1293_v56 = vpack.c.bf16 %v650_v51, %v650_v51  ;;  %v950_v59 = vsel %vm608_vm3, %v911_v49, 0.0  ;;  %639 = vst.msk [vmem:[#allocation2 + $0xf0] sm:$0xff] %vm608_vm3, %v1368_v10  ;;  %v593_v16 = vpop.f32.mrb[13].mxu1  ;;  %v1824_v35 = vld [vmem:[#allocation2 + $0xb8] sm:$0xff] }
 0x10d   : > { %810 = vst.msk [vmem:[%s1706_s14 + $0x20] sm:$0xf] %vm801_vm4, %v1292_v42  ;;  %v851_v60 = vsel %vm608_vm3, %v650_v51, 0.0  ;;  %v912_v61 = vmul.f32 %v650_v51, %v650_v51  ;;  %v914_v2 = vmul.f32 %v652_v45, %v652_v45  ;;  %v954_v11 = vsel %vm608_vm3, %v913_v58, 0.0  ;;  %819 = vst.msk [vmem:[%s1706_s14 + $0x44] sm:$0xf] %vm801_vm4, %v1301_v4 }
 0x10e   : > { %622 = vst.msk [vmem:[#allocation2 + $0x68] sm:$0xff] %vm608_vm3, %v532_v52  ;;  %v951_v63 = vadd.f32 %v950_v59, %v949_v55  ;;  %v852_v0 = vadd.f32 %v851_v60, %v850_v54  ;;  %v855_v12 = vsel %vm608_vm3, %v652_v45, 0.0  ;;  %637 = vst.msk [vmem:[#allocation2 + $0xe0] sm:$0xff] %vm608_vm3, %v593_v16  ;;  %v1369_v24 = vpop.f32.mrb[14].mxu1  ;;  %v966_v18 = vsel %vm608_vm3, %v919_v15, 0.0 }
 0x10f   : > { %813 = vst.msk [vmem:[%s1706_s14 + $0x2c] sm:$0xf] %vm801_vm4, %v1295_v50  ;;  %811 = vst.msk [vmem:[%s1706_s14 + $0x24] sm:$0xf] %vm801_vm4, %v1293_v56  ;;  %v952_v3 = vsel %vm608_vm3, %v912_v61, 0.0  ;;  %v956_v25 = vsel %vm608_vm3, %v914_v2, 0.0  ;;  %v1307_v49 = vpack.c.bf16 %v1824_v35, %v1824_v35  ;;  %v920_v54 = vmul.f32 %v1786_v57, %v1786_v57 }
 0x110   : > { %v854_v5 = vadd.f32 %v853_v1, %v852_v0  ;;  %v953_v6 = vadd.f32 %v952_v3, %v951_v63  ;;  %v655_v8 = vld [vmem:[#allocation2 + $0x70] sm:$0xff]  ;;  %824 = vst.msk [vmem:[%s1706_s14 + $0x58] sm:$0xf] %vm801_vm4, %v1306_v9  ;;  %v596_v30 = vpop.f32.mrb[15].mxu1  ;;  %v1838_v44 = vld [vmem:[#allocation2 + $0xc0] sm:$0xff]  ;;  %v1848_v51 = vld [vmem:[#allocation2 + $0xd8] sm:$0xff]  ;;  %v1305_v55 = vpack.c.bf16 %v1831_v40, %v1831_v40 }
 0x111   : > { %v1298_v13 = vpack.c.bf16 %v655_v8, %v655_v8  ;;  %v653_v14 = vld [vmem:[#allocation2 + $0x60] sm:$0xff]  ;;  %640 = vst.msk [vmem:[#allocation2 + $0xf8] sm:$0xff] %vm608_vm3, %v1369_v24  ;;  %638 = vst.msk [vmem:[#allocation2 + $0xe8] sm:$0xff] %vm608_vm3, %v596_v30  ;;  %v917_v36 = vmul.f32 %v655_v8, %v655_v8  ;;  %v1840_v45 = vld [vmem:[#allocation2 + $0xc8] sm:$0xff]  ;;  %v861_v46 = vsel %vm608_vm3, %v655_v8, 0.0  ;;  %v1308_v61 = vpack.c.bf16 %v1838_v44, %v1838_v44 }
 0x112   : > { %v955_v17 = vadd.f32 %v954_v11, %v953_v6  ;;  %v1296_v19 = vpack.c.bf16 %v653_v14, %v653_v14  ;;  %v856_v20 = vadd.f32 %v855_v12, %v854_v5  ;;  %v857_v21 = vsel %vm608_vm3, %v653_v14, 0.0  ;;  %v1846_v50 = vld [vmem:[#allocation2 + $0xd0] sm:$0xff]  ;;  %822 = vst.msk [vmem:[%s1706_s14 + $0x50] sm:$0xf] %vm801_vm4, %v1304_v43  ;;  %825 = vst.msk [vmem:[%s1706_s14 + $0x5c] sm:$0xf] %vm801_vm4, %v1307_v49 }
 0x113   : > { %v656_v22 = vld [vmem:[#allocation2 + $0x78] sm:$0xff]  ;;  %816 = vst.msk [vmem:[%s1706_s14 + $0x38] sm:$0xf] %vm801_vm4, %v1298_v13  ;;  %v915_v26 = vmul.f32 %v653_v14, %v653_v14  ;;  %v1856_v56 = vld [vmem:[#allocation2 + $0xf0] sm:$0xff]  ;;  %v962_v58 = vsel %vm608_vm3, %v917_v36, 0.0  ;;  %v1309_v63 = vpack.c.bf16 %v1840_v45, %v1840_v45  ;;  %v1310_v3 = vpack.c.bf16 %v1846_v50, %v1846_v50 }
 0x114   : > { %v1299_v27 = vpack.c.bf16 %v656_v22, %v656_v22  ;;  %814 = vst.msk [vmem:[%s1706_s14 + $0x30] sm:$0xf] %vm801_vm4, %v1296_v19  ;;  %v858_v31 = vadd.f32 %v857_v21, %v856_v20  ;;  %v957_v32 = vadd.f32 %v956_v25, %v955_v17  ;;  %v918_v47 = vmul.f32 %v656_v22, %v656_v22 }
 0x115   : > { %v654_v28 = vld [vmem:[#allocation2 + $0x68] sm:$0xff]  ;;  %v958_v37 = vsel %vm608_vm3, %v915_v26, 0.0  ;;  %v863_v59 = vsel %vm608_vm3, %v656_v22, 0.0  ;;  %v1862_v60 = vld [vmem:[#allocation2 + $0xe0] sm:$0xff]  ;;  %823 = vst.msk [vmem:[%s1706_s14 + $0x54] sm:$0xf] %vm801_vm4, %v1305_v55  ;;  %v1311_v4 = vpack.c.bf16 %v1848_v51, %v1848_v51  ;;  %v1314_v9 = vpack.c.bf16 %v1856_v56, %v1856_v56 }
 0x116   : > { %v1297_v33 = vpack.c.bf16 %v654_v28, %v654_v28  ;;  %817 = vst.msk [vmem:[%s1706_s14 + $0x3c] sm:$0xf] %vm801_vm4, %v1299_v27  ;;  %v859_v38 = vsel %vm608_vm3, %v654_v28, 0.0  ;;  %v916_v39 = vmul.f32 %v654_v28, %v654_v28  ;;  %v959_v41 = vadd.f32 %v958_v37, %v957_v32  ;;  %826 = vst.msk [vmem:[%s1706_s14 + $0x60] sm:$0xf] %vm801_vm4, %v1308_v61 }
 0x117   : > { %v860_v42 = vadd.f32 %v859_v38, %v858_v31  ;;  %v964_v5 = vsel %vm608_vm3, %v918_v47, 0.0  ;;  %v1312_v8 = vpack.c.bf16 %v1862_v60, %v1862_v60  ;;  %827 = vst.msk [vmem:[%s1706_s14 + $0x64] sm:$0xf] %vm801_vm4, %v1309_v63  ;;  %828 = vst.msk [vmem:[%s1706_s14 + $0x68] sm:$0xf] %vm801_vm4, %v1310_v3  ;;  %v921_v14 = vmul.f32 %v1736_v7, %v1736_v7 }
 0x118   : > { %815 = vst.msk [vmem:[%s1706_s14 + $0x34] sm:$0xf] %vm801_vm4, %v1297_v33  ;;  %v960_v48 = vsel %vm608_vm3, %v916_v39, 0.0  ;;  %v1870_v2 = vld [vmem:[#allocation2 + $0xf8] sm:$0xff]  ;;  %v1877_v6 = vld [vmem:[#allocation2 + $0xe8] sm:$0xff]  ;;  %v867_v15 = vsel %vm608_vm3, %v1786_v57, 0.0  ;;  %v922_v20 = vmul.f32 %v1755_v23, %v1755_v23  ;;  %v923_v57 = vmul.f32 %v1817_v29, %v1817_v29 }
 0x119   : > { %v862_v52 = vadd.f32 %v861_v46, %v860_v42  ;;  %v961_v53 = vadd.f32 %v960_v48, %v959_v41  ;;  %v1315_v10 = vpack.c.bf16 %v1870_v2, %v1870_v2  ;;  %v1313_v13 = vpack.c.bf16 %v1877_v6, %v1877_v6  ;;  %829 = vst.msk [vmem:[%s1706_s14 + $0x6c] sm:$0xf] %vm801_vm4, %v1311_v4 }
 0x11a   : > { %830 = vst.msk [vmem:[%s1706_s14 + $0x70] sm:$0xf] %vm801_vm4, %v1312_v8  ;;  %832 = vst.msk [vmem:[%s1706_s14 + $0x78] sm:$0xf] %vm801_vm4, %v1314_v9  ;;  %v869_v19 = vsel %vm608_vm3, %v1736_v7, 0.0  ;;  %v968_v21 = vsel %vm608_vm3, %v920_v54, 0.0  ;;  %v924_v32 = vmul.f32 %v1831_v40, %v1831_v40  ;;  %v925_v36 = vmul.f32 %v1793_v62, %v1793_v62 }
 0x11b   : > { %v963_v0 = vadd.f32 %v962_v58, %v961_v53  ;;  %v864_v1 = vadd.f32 %v863_v59, %v862_v52  ;;  %833 = vst.msk [vmem:[%s1706_s14 + $0x7c] sm:$0xf] %vm801_vm4, %v1315_v10  ;;  %831 = vst.msk [vmem:[%s1706_s14 + $0x74] sm:$0xf] %vm801_vm4, %v1313_v13  ;;  %v970_v25 = vsel %vm608_vm3, %v921_v14, 0.0  ;;  %v871_v26 = vsel %vm608_vm3, %v1755_v23, 0.0 }
 0x11c   : > { %v873_v27 = vsel %vm608_vm3, %v1817_v29, 0.0  ;;  %v972_v30 = vsel %vm608_vm3, %v922_v20, 0.0  ;;  %v974_v31 = vsel %vm608_vm3, %v923_v57, 0.0  ;;  %v875_v23 = vsel %vm608_vm3, %v1831_v40, 0.0  ;;  %s1457_s14 = sshll.u32 %s1566_s13, 4  ;;  %s1458_s14 = int_to_ptr.vmem [resolvable:$false] %s1457_s14 }
 0x11d   : > { %v866_v11 = vadd.f32 %v865_v34, %v864_v1  ;;  %v965_v12 = vadd.f32 %v964_v5, %v963_v0  ;;  %v877_v29 = vsel %vm608_vm3, %v1793_v62, 0.0  ;;  %v926_v39 = vmul.f32 %v1824_v35, %v1824_v35  ;;  %s1459_s22 = scalar_lea.vmem %s1458_s14, 256  ;;  %p1460_p1 = scmp.lt.s32.totalorder %s1989_s29, %s1458_s14 }
 0x11e   : > { %v927_v41 = vmul.f32 %v1838_v44, %v1838_v44  ;;  %v976_v42 = vsel %vm608_vm3, %v924_v32, 0.0  ;;  %v879_v46 = vsel %vm608_vm3, %v1824_v35, 0.0  ;;  %v881_v40 = vsel %vm608_vm3, %v1838_v44, 0.0  ;;  %p1461_p2 = scmp.lt.s32.totalorder %s1459_s22, %s1453_s12 }
 0x11f   : > { %v967_v16 = vadd.f32 %v966_v18, %v965_v12  ;;  %v868_v17 = vadd.f32 %v867_v15, %v866_v11  ;;  %v978_v47 = vsel %vm608_vm3, %v925_v36, 0.0  ;;  %v928_v49 = vmul.f32 %v1840_v45, %v1840_v45 }
 0x120   : > { %v980_v52 = vsel %vm608_vm3, %v926_v39, 0.0  ;;  %v982_v53 = vsel %vm608_vm3, %v927_v41, 0.0  ;;  %v883_v58 = vsel %vm608_vm3, %v1840_v45, 0.0  ;;  %v929_v35 = vmul.f32 %v1846_v50, %v1846_v50  ;;  %p1462_p3 = por %p1461_p2, %p1460_p1 }
 0x121   : > { %v870_v22 = vadd.f32 %v869_v19, %v868_v17  ;;  %v969_v24 = vadd.f32 %v968_v21, %v967_v16  ;;  %v885_v61 = vsel %vm608_vm3, %v1846_v50, 0.0  ;;  %v930_v63 = vmul.f32 %v1848_v51, %v1848_v51 }
 0x122   : > { %v931_v0 = vmul.f32 %v1862_v60, %v1862_v60  ;;  %v984_v1 = vsel %vm608_vm3, %v928_v49, 0.0  ;;  %v887_v45 = vsel %vm608_vm3, %v1848_v51, 0.0  ;;  %v889_v5 = vsel %vm608_vm3, %v1862_v60, 0.0  ;;  %p1463_p5 = pnand %p1462_p3, %p1456_p0 }
 0x123   : > { %v971_v28 = vadd.f32 %v970_v25, %v969_v24  ;;  %v872_v7 = vadd.f32 %v871_v26, %v870_v22  ;;  %v986_v8 = vsel %vm608_vm3, %v929_v35, 0.0  ;;  %v932_v10 = vmul.f32 %v1877_v6, %v1877_v6 }
 0x124   : > { %v988_v11 = vsel %vm608_vm3, %v930_v63, 0.0  ;;  %v990_v12 = vsel %vm608_vm3, %v931_v0, 0.0  ;;  %v891_v51 = vsel %vm608_vm3, %v1877_v6, 0.0  ;;  %v933_v60 = vmul.f32 %v1856_v56, %v1856_v56 }
 0x125   : > { %v874_v33 = vadd.f32 %v873_v27, %v872_v7  ;;  %v973_v34 = vadd.f32 %v972_v30, %v971_v28  ;;  %v893_v17 = vsel %vm608_vm3, %v1856_v56, 0.0  ;;  %v934_v19 = vmul.f32 %v1870_v2, %v1870_v2 }
 0x126   : > { %v992_v20 = vsel %vm608_vm3, %v932_v10, 0.0  ;;  %v895_v22 = vsel %vm608_vm3, %v1870_v2, 0.0  ;;  %v994_v6 = vsel %vm608_vm3, %v933_v60, 0.0 }
 0x127   : > { %v876_v37 = vadd.f32 %v875_v23, %v874_v33  ;;  %v975_v38 = vadd.f32 %v974_v31, %v973_v34  ;;  %v996_v56 = vsel %vm608_vm3, %v934_v19, 0.0 }
 0x129   : > { %v878_v18 = vadd.f32 %v877_v29, %v876_v37  ;;  %v977_v43 = vadd.f32 %v976_v42, %v975_v38 }
 0x12b   : > { %v880_v48 = vadd.f32 %v879_v46, %v878_v18  ;;  %v979_v62 = vadd.f32 %v978_v47, %v977_v43 }
 0x12d   : > { %v882_v54 = vadd.f32 %v881_v40, %v880_v48  ;;  %v981_v55 = vadd.f32 %v980_v52, %v979_v62 }
 0x12f   : > { %v884_v44 = vadd.f32 %v883_v58, %v882_v54  ;;  %v983_v59 = vadd.f32 %v982_v53, %v981_v55 }
 0x131   : > { %v886_v3 = vadd.f32 %v885_v61, %v884_v44  ;;  %v985_v4 = vadd.f32 %v984_v1, %v983_v59 }
 0x133   : > { %v888_v9 = vadd.f32 %v887_v45, %v886_v3  ;;  %v987_v50 = vadd.f32 %v986_v8, %v985_v4 }
 0x135   : > { %v890_v13 = vadd.f32 %v889_v5, %v888_v9  ;;  %v989_v14 = vadd.f32 %v988_v11, %v987_v50 }
 0x137   : > { %v892_v15 = vadd.f32 %v891_v51, %v890_v13  ;;  %v991_v16 = vadd.f32 %v990_v12, %v989_v14 }
 0x139   : > { %v894_v21 = vadd.f32 %v893_v17, %v892_v15  ;;  %v993_v57 = vadd.f32 %v992_v20, %v991_v16 }
 0x13b   : > { %v896_v24 = vadd.f32 %v895_v22, %v894_v21  ;;  %v995_v25 = vadd.f32 %v994_v6, %v993_v57 }
 0x13d   : > { %v897_v26 = vrot.slane %v896_v24, 4  ;;  %v997_v27 = vadd.f32 %v996_v56, %v995_v25 }
 0x13f   : > { %v898_v28 = vadd.f32 %v897_v26, %v896_v24  ;;  %v998_v7 = vrot.slane %v997_v27, 4 }
 0x141   : > { %v899_v30 = vrot.slane %v898_v28, 2  ;;  %v999_v31 = vadd.f32 %v998_v7, %v997_v27 }
 0x143   : > { %v900_v32 = vadd.f32 %v899_v30, %v898_v28  ;;  %v1000_v33 = vrot.slane %v999_v31, 2 }
 0x145   : > { %v901_v2 = vrot.slane %v900_v32, 1  ;;  %v1001_v34 = vadd.f32 %v1000_v33, %v999_v31 }
 0x147   : > { %v902_v36 = vadd.f32 %v901_v2, %v900_v32  ;;  %v1002_v23 = vrot.slane %v1001_v34, 1 }
 0x149   : > { %1004 = vst.msk [vmem:[%s236_s26] sm:$0xff] %vm608_vm3, %v902_v36  ;;  %v1003_v37 = vadd.f32 %v1002_v23, %v1001_v34 }
 0x14a   : > { %1466 = shalt.err (!%p1463_p5)
}
 0x14b   : > { %s1467_s24 = scalar_lea.hbm %s1987_s8, 128  ;;  %s1471_s7 = scalar_lea.hbm %s2070_s3, 256 }
 0x14c   : > { %p1468_p6 = scmp.ne.s32.totalorder %s1987_s8, %s1467_s24  ;;  %p1472_p10 = scmp.lt.u32.totalorder %s1987_s8, %s2070_s3 }
 0x14d   : > { %p1473_p11 = scmp.lt.u32.totalorder %s1471_s7, %s1467_s24  ;;  %p1475_p13 = scmp.lt.u32.totalorder %s1467_s24, %s1987_s8 }
 0x14e   : > { %p1469_p7 = pnand %p1468_p6, %p1633_p4 }
 0x14f   : > { %p1474_p12 = por %p1473_p11, %p1472_p10 }
 0x150   : > { %p1470_p9 = pneg %p1469_p7 }
 0x151   : > { %p1476_p0 = por %p1475_p13, %p1474_p12 }
 0x153   : > { %p1477_p1 = pnand %p1476_p0, %p1470_p9 }
 0x155   : > { %1480 = shalt.err (!%p1477_p1)
}
 0x156   : > { %1374 = dma.vmem_to_hbm [thread:$0]  (%p1633_p4), %s1989_s29, 128, %s1987_s8, %s1015_s11   ;;  %1005 = vst.msk [vmem:[%s1981_s30] sm:$0xff] %vm608_vm3, %v1003_v37 }
 0x157   : > { %s1020_s12 = scalar_lea.sflag [#allocation6], %s1976_s21  ;;  %s1481_s13 = scalar_lea.vmem %s1997_s5, 128 }
 0x158   : > { %p1482_p2 = scmp.ne.s32.totalorder %s1997_s5, %s1481_s13  ;;  %s1567_s14 = smov [#allocation5]  }
 0x159   : > { %s1485_s22 = sshll.u32 %s1567_s14, 4  ;;  %s1486_s22 = int_to_ptr.vmem [resolvable:$false] %s1485_s22 }
 0x15a   : > { %p1483_p3 = pnand %p1482_p2, %p1633_p4  ;;  %s1487_s24 = scalar_lea.vmem %s1486_s22, 256 }
 0x15b   : > { %p1488_p6 = scmp.lt.s32.totalorder %s1997_s5, %s1486_s22  ;;  %p1489_p7 = scmp.lt.s32.totalorder %s1487_s24, %s1481_s13 }
 0x15c   : > { %p1484_p5 = pneg %p1483_p3 }
 0x15d   : > { %p1490_p9 = por %p1489_p7, %p1488_p6 }
 0x15f   : > { %p1491_p10 = pnand %p1490_p9, %p1484_p5 }
 0x161   : > { %1494 = shalt.err (!%p1491_p10)
}
 0x162   : > { %s1495_s21 = scalar_lea.hbm %s1995_s10, 128  ;;  %s1499_s8 = scalar_lea.hbm %s2071_s4, 256 }
 0x163   : > { %p1496_p11 = scmp.ne.s32.totalorder %s1995_s10, %s1495_s21  ;;  %p1500_p0 = scmp.lt.u32.totalorder %s1995_s10, %s2071_s4 }
 0x164   : > { %p1501_p1 = scmp.lt.u32.totalorder %s1499_s8, %s1495_s21  ;;  %p1503_p3 = scmp.lt.u32.totalorder %s1495_s21, %s1995_s10 }
 0x165   : > { %p1497_p12 = pnand %p1496_p11, %p1633_p4 }
 0x166   : > { %p1502_p2 = por %p1501_p1, %p1500_p0 }
 0x167   : > { %p1498_p13 = pneg %p1497_p12 }
 0x168   : > { %p1504_p5 = por %p1503_p3, %p1502_p2 }
 0x16a   : > { %p1505_p6 = pnand %p1504_p5, %p1498_p13 }
 0x16c   : > { %1508 = shalt.err (!%p1505_p6)
}
 0x16d   : > { %1375 = dma.vmem_to_hbm [thread:$0]  (%p1633_p4), %s1997_s5, 128, %s1995_s10, %s1020_s12  }
 0x16e PF: > { %p1385_p7 = scmp.ge.s32.totalorder %s1563_s20, 2  ;;  %s1075_s6 = sand.u32 1, %s1543_s15  }
 0x16f   : > { %s1076_s7 = scalar_lea.sflag [#allocation4], %s1075_s6 }
 0x170   : > { %p1379_p9 = pnand %p1385_p7, %p1640_p8 }
 0x172   : > { %1534 = dma.done.wait (!%p1379_p9), %s1076_s7, 128  }
 0x173   : > { %1536 = vsyncadd (!%p1379_p9), %s1076_s7, 4294967168  ;;  %s1085_s18 = scalar_lea.sflag [#allocation6], %s1075_s6 }
 0x174   : > { %1538 = dma.done.wait (!%p1379_p9), %s1085_s18, 128  }
 0x175   : > { %1540 = vsyncadd (!%p1379_p9), %s1085_s18, 4294967168  ;;  %s21_s20 = sadd.s32 1, %s1563_s20   ;;  %s2074_s15 = smov %s1547_s16 }
 0x176   : > { %p18_p10 = scmp.ge.s32.totalorder %s21_s20, 4   ;;  %s2075_s16 = smov %s1551_s17 }
 0x177   : > { %s2076_s17 = smov %s1646_s28  ;;  %s2077_s18 = smov %s1559_s19 }
 0x178   : > { %s2078_s19 = smov %s2080_s23  ;;  %20 = sbr.rel (!%p18_p10) target bundleno = 6 (0x6), region = 95 }
 0x17f   :  { %1090 = vsyncpa [#allocation4], 1 }
 0x180   :  { %1092 = vsyncpa [#allocation4 + $0x1], 1 }
 0x181   :  { %1093 = vsyncpa [#allocation6], 1 }
 0x182   :  { %1095 = vsyncpa [#allocation6 + $0x1], 1 }

</bundles_post_ra>
